<compile_context>
chip_gen: v6e
topology: v6e:2x2x1
jax: 0.10.0
libtpu: 0.0.40
codegen_flags: <defaults>
</compile_context>

<pallas_src>
import functools

import jax
import jax.numpy as jnp
from jax import lax
from jax.experimental import pallas as pl
from jax.experimental.pallas import tpu as pltpu


# ---------------------------------------------------------------------------
# Chip-aware VMEM budget: v7x has only 64 MiB VMEM per TensorCore, v5e/v6e 128 MiB.
# ---------------------------------------------------------------------------
@functools.lru_cache(maxsize=None)
def _vmem_budget_bytes():
    try:
        cap = int(pltpu.get_tpu_info().vmem_capacity_bytes)
    except Exception:
        cap = 64 * 1024 * 1024  # conservative fallback (v7x-sized)
    # Leave headroom for compiler scratch; never ask for more than 96 MiB scoped.
    return int(min(96 * 1024 * 1024, (cap * 3) // 4))


# ---------------------------------------------------------------------------
# Fused path: one channel slab per grid step, stats + normalize in one kernel.
# ---------------------------------------------------------------------------
def _fused_norm_kernel(x_ref, o_ref, *, inv_count, eps):
    # x_ref / o_ref: (N, 1, H, W) -- a full per-channel slab resident in VMEM.
    x = x_ref[...].astype(jnp.float32)
    mean = jnp.sum(x) * inv_count
    centered = x - mean
    var = jnp.sum(centered * centered) * inv_count  # centered: no cancellation
    inv_std = lax.rsqrt(var + eps)
    o_ref[...] = (centered * inv_std).astype(o_ref.dtype)


# ---------------------------------------------------------------------------
# Fallback path, pass 1: per-row (per (n, c)) sum and sum-of-squares.
# acc_ref is a resident (TR, 2) f32 accumulator: lane 0 = sum, lane 1 = sumsq.
# ---------------------------------------------------------------------------
def _stats_kernel(x_ref, acc_ref, *, last_valid, mask_cols):
    j = pl.program_id(1)

    @pl.when(j == 0)
    def _init():
        acc_ref[...] = jnp.zeros_like(acc_ref)

    def _accum(x):
        acc_ref[:, 0:1] += jnp.sum(x, axis=1, keepdims=True)
        acc_ref[:, 1:2] += jnp.sum(x * x, axis=1, keepdims=True)

    if mask_cols:
        last = pl.num_programs(1) - 1

        @pl.when(j != last)
        def _interior():  # unmasked fast path for interior tiles
            _accum(x_ref[...].astype(jnp.float32))

        @pl.when(j == last)
        def _edge():  # mask only the (single) ragged last column block
            x = x_ref[...].astype(jnp.float32)
            col = lax.broadcasted_iota(jnp.int32, x.shape, 1)
            _accum(jnp.where(col < last_valid, x, 0.0))
    else:
        _accum(x_ref[...].astype(jnp.float32))


# ---------------------------------------------------------------------------
# Fallback path, pass 2: elementwise normalize with per-row (mean, inv_std).
# ---------------------------------------------------------------------------
def _normalize_kernel(x_ref, mi_ref, o_ref):
    x = x_ref[...].astype(jnp.float32)
    mean = mi_ref[:, 0:1]     # (TR, 1), broadcast over lanes
    inv_std = mi_ref[:, 1:2]  # (TR, 1)
    o_ref[...] = ((x - mean) * inv_std).astype(o_ref.dtype)


def _pick_tiles(rows, cols, budget):
    """Tiles up to ~8 MiB (chip-budget permitting); lane tile a multiple of 128 or
    the full dim; row tile a multiple of 8 or the full dim.  Pass 2 holds roughly
    5x tile bytes in VMEM (double-buffered in/out + f32 temp)."""
    tile_bytes = min(8 * 1024 * 1024, budget // 6)
    max_elems = max(tile_bytes // 4, 8 * 128)
    tc = cols if cols <= 4096 else 4096
    max_tr = max(8, (max_elems // tc) // 8 * 8)
    tr = rows if rows <= max_tr else max_tr
    # v7x megacore: ensure the "parallel" row axis has >= 2 blocks when possible
    # so both TensorCores participate in the stats pass.
    if rows > 8 and -(-rows // tr) < 2:
        tr = ((rows + 15) // 16) * 8
    return tr, tc


@functools.partial(jax.jit, static_argnames=("eps", "force_two_pass"))
def vnorm2d_forward(x, *, eps=1e-5, force_two_pass=False):
    """x: (N, C, H, W). Returns training-mode batch-normalized x (no affine)."""
    N, C, H, W = x.shape
    budget = _vmem_budget_bytes()
    count = N * H * W

    # ---- fused single-pass path: gate on padded per-channel slab VMEM cost ----
    hp = -(-H // 8) * 8
    wp = -(-W // 128) * 128
    slab_io = N * hp * wp * x.dtype.itemsize       # one (N,1,H,W) slab, padded
    slab_f32 = N * hp * wp * 4                     # in-kernel f32 temporaries
    fused_vmem = 4 * slab_io + 2 * slab_f32 + (1 << 20)  # 2x in + 2x out buffers
    if (not force_two_pass) and fused_vmem <= budget:
        return pl.pallas_call(
            functools.partial(_fused_norm_kernel,
                              inv_count=1.0 / float(count), eps=float(eps)),
            out_shape=jax.ShapeDtypeStruct((N, C, H, W), x.dtype),
            grid=(C,),
            in_specs=[pl.BlockSpec((N, 1, H, W), lambda c: (0, c, 0, 0))],
            out_specs=pl.BlockSpec((N, 1, H, W), lambda c: (0, c, 0, 0)),
            compiler_params=pltpu.CompilerParams(
                dimension_semantics=("parallel",),
                vmem_limit_bytes=budget),
        )(x)

    # ---- fallback: two streaming passes over the contiguous (N*C, H*W) view ----
    R, M = N * C, H * W
    x2 = x.reshape(R, M)                            # free reshape, no transpose
    TR, TC = _pick_tiles(R, M, budget)
    row_blocks = -(-R // TR)
    col_blocks = -(-M // TC)
    last_valid = M - (col_blocks - 1) * TC
    mask_cols = (M % TC) != 0

    # Pass 1: per-row sum / sumsq packed into one (R, 2) f32 output.
    # (Rows of the last row block beyond R accumulate padded garbage; writeback
    #  clips to R and the combine below never reads them.)
    sums = pl.pallas_call(
        functools.partial(_stats_kernel, last_valid=last_valid, mask_cols=mask_cols),
        out_shape=jax.ShapeDtypeStruct((R, 2), jnp.float32),
        grid=(row_blocks, col_blocks),
        in_specs=[pl.BlockSpec((TR, TC), lambda i, j: (i, j))],
        out_specs=pl.BlockSpec((TR, 2), lambda i, j: (i, 0)),
        compiler_params=pltpu.CompilerParams(
            dimension_semantics=("parallel", "arbitrary"),
            vmem_limit_bytes=budget),
    )(x2)

    # Tiny O(N*C) combine in plain JAX: fold batch partials, per-channel stats.
    partials = jnp.sum(sums.reshape(N, C, 2), axis=0)          # (C, 2)
    inv_cnt = 1.0 / float(N * M)
    mean_c = partials[:, 0] * inv_cnt
    # TODO(synk): E[x^2] - mean^2 in f32 can lose precision when |mean| >> std on
    # very large counts; the fused path uses a centered variance, this fallback
    # accepts the tradeoff to keep HBM traffic at 2 reads + 1 write.
    var_c = jnp.maximum(partials[:, 1] * inv_cnt - mean_c * mean_c, 0.0)
    inv_c = lax.rsqrt(var_c + eps)
    mi_rows = jnp.tile(jnp.stack([mean_c, inv_c], axis=-1), (N, 1))  # (R, 2)

    # Pass 2: normalize; lane-dense (TR, TC) output tiles, both axes parallel.
    out2 = pl.pallas_call(
        _normalize_kernel,
        out_shape=jax.ShapeDtypeStruct((R, M), x.dtype),
        grid=(row_blocks, col_blocks),
        in_specs=[pl.BlockSpec((TR, TC), lambda i, j: (i, j)),
                  pl.BlockSpec((TR, 2), lambda i, j: (i, 0))],
        out_specs=pl.BlockSpec((TR, TC), lambda i, j: (i, j)),
        compiler_params=pltpu.CompilerParams(
            dimension_semantics=("parallel", "parallel"),
            vmem_limit_bytes=budget),
    )(x2, mi_rows)

    return out2.reshape(N, C, H, W)


class VNorm2dParams:
    """Deterministic parameter init mirroring VNorm2d.__init__ shapes.

    weight_proj / bias_proj (spectral-normed 1x1 convs from num_w -> num_features)
    exist in the module but are NOT used by forward(); they are initialized here
    only for shape fidelity.
    """

    def __init__(self, num_features, num_w=32, key=jax.random.PRNGKey(0)):
        k1, k2, k3, k4 = jax.random.split(key, 4)
        self.num_features = num_features
        # Conv2d(num_w, num_features, kernel_size=1): weight (out, in, 1, 1), bias (out,)
        self.weight_proj_w = jax.random.normal(k1, (num_features, num_w, 1, 1), jnp.float32) * 0.02
        self.weight_proj_b = jax.random.normal(k2, (num_features,), jnp.float32) * 0.02
        self.bias_proj_w = jax.random.normal(k3, (num_features, num_w, 1, 1), jnp.float32) * 0.02
        self.bias_proj_b = jax.random.normal(k4, (num_features,), jnp.float32) * 0.02
        # TODO(synk): spectral_norm power iteration and running-stats (momentum)
        # updates have no effect on this forward output and are not implemented.
        self.eps = 1e-5

    def __call__(self, x, vector=None, bbox=None, vis=False):
        # Matches VNorm2d.forward: only the batch norm of x is returned.
        return vnorm2d_forward(x, eps=self.eps)


if __name__ == "__main__":
    key = jax.random.PRNGKey(0)
    kx, kv, kb = jax.random.split(key, 3)

    N, C, H, W = 2, 4, 16, 16
    num_w = 32
    num_objects = 3

    x = jax.random.normal(kx, (N, C, H, W), jnp.float32)
    vector = jax.random.normal(kv, (N * num_objects, num_w), jnp.float32)  # unused by forward
    bbox = jax.random.uniform(kb, (N, num_objects, H, W), jnp.float32)     # unused by forward

    module = VNorm2dParams(num_features=C, num_w=num_w, key=jax.random.PRNGKey(0))
    out = jax.block_until_ready(module(x, vector, bbox))

    # sanity check against a pure-JAX reference (training-mode BatchNorm2d, affine=False)
    mean = jnp.mean(x, axis=(0, 2, 3), keepdims=True)
    var = jnp.mean((x - mean) ** 2, axis=(0, 2, 3), keepdims=True)
    ref = (x - mean) / jnp.sqrt(var + 1e-5)
    assert out.shape == (N, C, H, W)
    assert jnp.max(jnp.abs(out - ref)) < 1e-4

    # also exercise the large-tensor fallback (two streaming passes) at a small shape
    out2 = jax.block_until_ready(vnorm2d_forward(x, eps=1e-5, force_two_pass=True))
    assert jnp.max(jnp.abs(out2 - ref)) < 1e-4

    print("KERNEL_OK")
</pallas_src>

<mosaic_0001>
module attributes {stable_mosaic.version = 11 : i64} {
  func.func @_fused_norm_kernel(%arg0: i32, %arg1: memref<2x1x16x16xf32, #tpu.memory_space<vmem>>, %arg2: memref<2x1x16x16xf32, #tpu.memory_space<vmem>>) attributes {dimension_semantics = [#tpu.dimension_semantics<parallel>], iteration_bounds = array<i64: 4>, scalar_prefetch = 0 : i64, scratch_operands = 0 : i64, tpu.core_type = #tpu.core_type<tc>, window_params = [{transform_indices = @transform_0, window_bounds = array<i64: 2, 1, 16, 16>}, {transform_indices = @transform_1, window_bounds = array<i64: 2, 1, 16, 16>}]} {
    %c0 = arith.constant 0 : index
    %c0_0 = arith.constant 0 : index
    %c0_1 = arith.constant 0 : index
    %c0_2 = arith.constant 0 : index
    %0 = vector.load %arg1[%c0, %c0_0, %c0_1, %c0_2] : memref<2x1x16x16xf32, #tpu.memory_space<vmem>>, vector<2x1x16x16xf32>
    %1 = vector.shape_cast %0 : vector<2x1x16x16xf32> to vector<1x2x1x16x16xf32>
    %cst = arith.constant dense<0.000000e+00> : vector<1xf32>
    %2 = vector.multi_reduction <add>, %1, %cst [1, 2, 3, 4] : vector<1x2x1x16x16xf32> to vector<1xf32>
    %3 = vector.shape_cast %2 : vector<1xf32> to vector<1x1x1x1x1xf32>
    %4 = vector.extract %3[0, 0, 0, 0, 0] : f32 from vector<1x1x1x1x1xf32>
    %cst_3 = arith.constant 0.001953125 : f32
    %5 = arith.mulf %4, %cst_3 : f32
    %6 = vector.broadcast %5 : f32 to vector<2x1x16x16xf32>
    %7 = arith.subf %0, %6 : vector<2x1x16x16xf32>
    %8 = arith.mulf %7, %7 : vector<2x1x16x16xf32>
    %9 = vector.shape_cast %8 : vector<2x1x16x16xf32> to vector<1x2x1x16x16xf32>
    %cst_4 = arith.constant dense<0.000000e+00> : vector<1xf32>
    %10 = vector.multi_reduction <add>, %9, %cst_4 [1, 2, 3, 4] : vector<1x2x1x16x16xf32> to vector<1xf32>
    %11 = vector.shape_cast %10 : vector<1xf32> to vector<1x1x1x1x1xf32>
    %12 = vector.extract %11[0, 0, 0, 0, 0] : f32 from vector<1x1x1x1x1xf32>
    %cst_5 = arith.constant 0.001953125 : f32
    %13 = arith.mulf %12, %cst_5 : f32
    %cst_6 = arith.constant 9.99999974E-6 : f32
    %14 = arith.addf %13, %cst_6 : f32
    %15 = math.rsqrt %14 : f32
    %16 = vector.broadcast %15 : f32 to vector<2x1x16x16xf32>
    %17 = arith.mulf %7, %16 : vector<2x1x16x16xf32>
    %c0_7 = arith.constant 0 : index
    %c0_8 = arith.constant 0 : index
    %c0_9 = arith.constant 0 : index
    %c0_10 = arith.constant 0 : index
    %18 = vector.load %arg2[%c0_7, %c0_8, %c0_9, %c0_10] : memref<2x1x16x16xf32, #tpu.memory_space<vmem>>, vector<2x1x16x16xf32>
    tpu.vector_store %arg2[%c0_7, %c0_8, %c0_9, %c0_10], %17 {strides = array<i32>} : memref<2x1x16x16xf32, #tpu.memory_space<vmem>>, vector<2x1x16x16xf32>,
    return
  }
  func.func @transform_0(%arg0: i32) -> (i32, i32, i32, i32) {
    %c0_i32 = arith.constant 0 : i32
    %c0_i32_0 = arith.constant 0 : i32
    %c0_i32_1 = arith.constant 0 : i32
    %c0_i32_2 = arith.constant 0 : i32
    return %c0_i32, %arg0, %c0_i32_0, %c0_i32_1 : i32, i32, i32, i32
  }
  func.func @transform_1(%arg0: i32) -> (i32, i32, i32, i32) {
    %c0_i32 = arith.constant 0 : i32
    %c0_i32_0 = arith.constant 0 : i32
    %c0_i32_1 = arith.constant 0 : i32
    %c0_i32_2 = arith.constant 0 : i32
    return %c0_i32, %arg0, %c0_i32_0, %c0_i32_1 : i32, i32, i32, i32
  }
}

</mosaic_0001>

<bundles_post_ra>
// kernel: vnorm2d_forward.1
= control target key start
LH: loop header
LB: loop body
LE: loop exit
PB: predicated region body
PF: predicated region fallthrough
CT: control target
= control target key end

     0   :  { %6 = vsyncpa [#allocation3], 0  ;;  %s628_s0 = inlined_call_operand.hbm [shape: f32[2,4,16,16], index: 0, kind: input, shape index: {}]   ;;  %s629_s1 = inlined_call_operand.hbm [shape: f32[2,4,16,16], index: 1, kind: output, shape index: {}]  }
   0x1   :  { %8 = vsyncpa [#allocation3 + $0x1], 0 }
   0x2   :  { %9 = vsyncpa [#allocation4], 0 }
   0x3   :  { %11 = vsyncpa [#allocation4 + $0x1], 0  ;;  %s487_s6 = smov 0   ;;  %s489_s7 = smov 0  }
   0x4   :  { %s491_s8 = smov 0   ;;  %s493_s9 = smov 0  }
   0x5 LB: > { %s508_s10 = sadd.s32 4294967295, %s462_s9   ;;  %s331_s11 = sadd.s32 4294967294, %s462_s9   ;;  %s462_s9 = sphi %s493_s9, %s637_s9   ;;  %s458_s8 = sphi %s491_s8, %s636_s8   ;;  %s454_s7 = sphi %s489_s7, %s635_s7   ;;  %s450_s6 = sphi %s487_s6, %s634_s6  }
   0x6   : > { %s512_s12 = sadd.s32 1, %s462_s9   ;;  %s24_s13 = sadd.s32 1, %s458_s8 }
   0x7   : > { %s21_s14 = ssub.s32 %s462_s9, %s512_s12  ;;  %p31_p0 = scmp.ne.s32.totalorder %s458_s8, %s454_s7 }
   0x8   : > { %p22_p1 = scmp.eq.s32.totalorder %s21_s14, 0  ;;  %p32_p2 = scmp.eq.s32.totalorder %s462_s9, 0 }
   0x9   : > { %p37_p3 = scmp.ne.s32.totalorder %s454_s7, %s450_s6  ;;  %p38_p4 = scmp.eq.s32.totalorder %s508_s10, 0 }
   0xa   : > { %s524_s15 = scalar_select %p22_p1, %s458_s8, %s24_s13  }
   0xb   : > { %p526_p5 = por %p32_p2, %p31_p0  ;;  %p530_p6 = por %p38_p4, %p37_p3 }
   0xc   : > { %p61_p7 = scmp.eq.s32.totalorder %s508_s10, 3  ;;  %p67_p8 = scmp.eq.s32.totalorder %s331_s11, 3 }
   0xd   : > { %p333_p11 = scmp.ge.s32.totalorder %s462_s9, 4 }
   0xe   : > { %p535_p9 = por %p61_p7, %p31_p0  ;;  %p539_p10 = por %p67_p8, %p37_p3 }
   0xf   : > { %83 = sbr.rel (%p333_p11) target bundleno = 33 (0x21), region = 16 }
  0x14   : > { %s87_s20 = sand.u32 1, %s458_s8   ;;  %s347_s21 = sshll.u32 %s462_s9, 8 }
  0x15   : > { %s334_s22 = sshll.u32 %s87_s20, 5  ;;  %s97_s25 = scalar_lea.hbm %s628_s0, %s347_s21 }
  0x16   : > { %s355_s26 = scalar_select %p526_p5, [#allocation0], [#allocation10] }
  0x17   : > { %s91_s27 = scalar_lea.vmem [#allocation2], %s334_s22  ;;  %s464_s30 = smov 1024  }
  0x18   : > { %s110_s28 = sshll.u32 %s91_s27, 4  ;;  %s102_s29 = sld [smem:[%s355_s26]]   ;;  %s111_s28 = int_to_ptr.vmem [resolvable:$true] %s110_s28 }
  0x19   : > { %356 = sst [smem:[#allocation7]] (%p526_p5), %s464_s30  ;;  %s465_s2 = smov 256  }
  0x1a   : > { %357 = sst [smem:[#allocation7 + $0x1]] (%p526_p5), %s465_s2  ;;  %s466_s3 = smov 2  }
  0x1b   : > { %358 = sst [smem:[#allocation7 + $0x2]] (%p526_p5), %s466_s3  ;;  %s467_s4 = smov 128  }
  0x1c   : > { %359 = sst [smem:[#allocation7 + $0x3]] (%p526_p5), %s467_s4  ;;  %s468_s11 = smov 8  }
  0x1d   : > { %360 = sst [smem:[#allocation7 + $0x4]] (%p526_p5), %s467_s4  ;;  %s88_s14 = scalar_lea.sflag [#allocation3], %s87_s20 }
  0x1e   : > { %s337_s5 = sshll.u32 %s102_s29, 26  ;;  %361 = sst [smem:[#allocation7 + $0x5]] (%p526_p5), %s468_s11 }
  0x1f   : > { %s338_s13 = sadd.s32 134217728, %s337_s5  ;;  %s469_s21 = smov 131072  }
  0x20   : > { %362 = dma.general (%p526_p5), %s97_s25, 512, %s111_s28, %s88_s14, %s469_s21, [#allocation7], %s338_s13, 0  }
  0x21 PF: > { %p339_p12 = scmp.ge.s32.totalorder %s462_s9, 1  ;;  %p131_p13 = scmp.lt.s32.totalorder %s462_s9, 5 }
  0x23   : > { %p132_p0 = pnand %p339_p12, %p131_p13 }
  0x24   : > { %s568_s22 = sand.u32 (!%p132_p0), 1, %s454_s7  }
  0x25   : > { %135 = sbr.rel (%p132_p0) target bundleno = 548 (0x224), region = 24  ;;  %s340_s23 = sshll.u32 (!%p132_p0), %s568_s22, 5 }
  0x26   : > { %s138_s24 = scalar_lea.sflag (!%p132_p0), [#allocation3], %s568_s22  ;;  %s141_s20 = scalar_lea.vmem (!%p132_p0), [#allocation2], %s340_s23 }
  0x2a   : > { %441 = dma.done.wait (%p530_p6), %s138_s24, 512  }
  0x2b   : > { %443 = vsyncadd (%p530_p6), %s138_s24, 4294966784  ;;  %vm164_vm0 = vcmask 130048   ;;  %v160_v0 = vld [vmem:[%s141_s20] sm:$0xff]  ;;  %v161_v1 = vld [vmem:[%s141_s20 + $0x8] sm:$0xff]  ;;  %s159_s29 = scalar_lea.vmem [#allocation5], %s340_s23  ;;  %s222_s30 = scalar_lea.sflag [#allocation4], %s568_s22 }
  0x2c   : > { %v162_v2 = vld [vmem:[%s141_s20 + $0x10] sm:$0xff]  ;;  %v163_v3 = vld [vmem:[%s141_s20 + $0x18] sm:$0xff]  ;;  %v165_v4 = vsel %vm164_vm0, %v160_v0, 0.0  ;;  %v166_v5 = vsel %vm164_vm0, %v161_v1, 0.0 }
  0x2d   : > { %v168_v6 = vsel %vm164_vm0, %v162_v2, 0.0  ;;  %v167_v7 = vadd.f32 %v166_v5, %v165_v4  ;;  %v170_v8 = vsel %vm164_vm0, %v163_v3, 0.0 }
  0x2f   : > { %v169_v9 = vadd.f32 %v168_v6, %v167_v7 }
  0x31   : > { %v171_v10 = vadd.f32 %v170_v8, %v169_v9 }
  0x33   : > { %172 = vadd.xlane.f32.xlu0 %v171_v10 }
  0xbc   : > { %v173_v11 = vpop.xlane.xlu0 %172 }
  0xbd   : > { %v174_v12 = vrot.slane %v173_v11, 4 }
  0xbf   : > { %v175_v13 = vadd.f32 %v174_v12, %v173_v11 }
  0xc1   : > { %v176_v14 = vrot.slane %v175_v13, 2 }
  0xc3   : > { %v177_v15 = vadd.f32 %v176_v14, %v175_v13 }
  0xc5   : > { %v178_v16 = vrot.slane %v177_v15, 1 }
  0xc7   : > { %v179_v17 = vadd.f32 %v178_v16, %v177_v15 }
  0xc9   : > { %349 = vpush %v179_v17 }
  0xfa   : > { %s350_s16 = spop %349 }
  0xfb   : > { %s181_s17 = smul.f32 0.001953125, %s350_s16 }
  0xfd   : > { %v182_v18 = vstv %s181_s17 }
  0xfe   : > { %v183_v19 = vsub.f32 %v160_v0, %v182_v18  ;;  %v184_v20 = vsub.f32 %v161_v1, %v182_v18  ;;  %v185_v21 = vsub.f32 %v162_v2, %v182_v18  ;;  %v186_v22 = vsub.f32 %v163_v3, %v182_v18 }
 0x100   : > { %v187_v23 = vmul.f32 %v183_v19, %v183_v19  ;;  %v188_v24 = vmul.f32 %v184_v20, %v184_v20  ;;  %v189_v25 = vmul.f32 %v185_v21, %v185_v21  ;;  %v190_v26 = vmul.f32 %v186_v22, %v186_v22 }
 0x102   : > { %v191_v27 = vsel %vm164_vm0, %v187_v23, 0.0  ;;  %v192_v28 = vsel %vm164_vm0, %v188_v24, 0.0  ;;  %v194_v30 = vsel %vm164_vm0, %v189_v25, 0.0  ;;  %v196_v32 = vsel %vm164_vm0, %v190_v26, 0.0 }
 0x103   : > { %v193_v29 = vadd.f32 %v192_v28, %v191_v27 }
 0x105   : > { %v195_v31 = vadd.f32 %v194_v30, %v193_v29 }
 0x107   : > { %v197_v33 = vadd.f32 %v196_v32, %v195_v31 }
 0x109   : > { %198 = vadd.xlane.f32.xlu0 %v197_v33 }
 0x192   : > { %v199_v34 = vpop.xlane.xlu0 %198 }
 0x193   : > { %v200_v35 = vrot.slane %v199_v34, 4 }
 0x195   : > { %v201_v36 = vadd.f32 %v200_v35, %v199_v34 }
 0x197   : > { %v202_v37 = vrot.slane %v201_v36, 2 }
 0x199   : > { %v203_v38 = vadd.f32 %v202_v37, %v201_v36 }
 0x19b   : > { %v204_v39 = vrot.slane %v203_v38, 1 }
 0x19d   : > { %v205_v40 = vadd.f32 %v204_v39, %v203_v38 }
 0x19f   : > { %351 = vpush %v205_v40 }
 0x1d0   : > { %s352_s25 = spop %351 }
 0x1d1   : > { %s207_s26 = smul.f32 0.001953125, %s352_s25 }
 0x1d3   : > { %s208_s27 = sadd.f32 1e-05, %s207_s26 }
 0x1d5   : > { %v209_v41 = vstv %s208_s27 }
 0x1d6   : > { %422 = vrsqrt.f32 %v209_v41 }
 0x1e3   : > { %v423_v42 = vpop.eup %422 }
 0x1e4   : > { %353 = vpush %v423_v42 }
 0x215   : > { %s354_s28 = spop %353 }
 0x216   : > { %v212_v43 = vstv %s354_s28 }
 0x217   : > { %v213_v44 = vmul.f32 %v212_v43, %v183_v19  ;;  %v214_v45 = vmul.f32 %v212_v43, %v184_v20  ;;  %v215_v46 = vmul.f32 %v212_v43, %v185_v21  ;;  %v216_v47 = vmul.f32 %v212_v43, %v186_v22 }
 0x219   : > { %217 = vst.msk [vmem:[%s159_s29] sm:$0xff] %vm164_vm0, %v213_v44  ;;  %218 = vst.msk [vmem:[%s159_s29 + $0x8] sm:$0xff] %vm164_vm0, %v214_v45 }
 0x21a   : > { %219 = vst.msk [vmem:[%s159_s29 + $0x10] sm:$0xff] %vm164_vm0, %v215_v46  ;;  %220 = vst.msk [vmem:[%s159_s29 + $0x18] sm:$0xff] %vm164_vm0, %v216_v47 }
 0x21b   : > { %s348_s2 = sshll.u32 %s508_s10, 8  ;;  %s245_s3 = sshll.u32 %s159_s29, 4  ;;  %s246_s3 = int_to_ptr.vmem [resolvable:$true] %s245_s3 }
 0x21c   : > { %s234_s11 = scalar_lea.hbm %s629_s1, %s348_s2  ;;  %s470_s13 = smov 256  }
 0x21d   : > { %364 = sst [smem:[#allocation9]] (%p535_p9), %s470_s13  ;;  %s471_s14 = smov 1024  }
 0x21e   : > { %365 = sst [smem:[#allocation9 + $0x1]] (%p535_p9), %s471_s14  ;;  %s472_s21 = smov 2  }
 0x21f   : > { %366 = sst [smem:[#allocation9 + $0x2]] (%p535_p9), %s472_s21  ;;  %s473_s22 = smov 128  }
 0x220   : > { %367 = sst [smem:[#allocation9 + $0x3]] (%p535_p9), %s473_s22  ;;  %s474_s10 = smov 8  }
 0x221   : > { %368 = sst [smem:[#allocation9 + $0x4]] (%p535_p9), %s473_s22  ;;  %s475_s23 = smov 131072  }
 0x222   : > { %369 = sst [smem:[#allocation9 + $0x5]] (%p535_p9), %s474_s10  ;;  %s476_s24 = smov 0  }
 0x223   : > { %370 = dma.general (%p535_p9), %s246_s3, 512, %s234_s11, %s222_s30, %s475_s23, [#allocation9], %s476_s24, 0  }
 0x224 PF: > { %p376_p1 = scmp.ge.s32.totalorder %s462_s9, 2  ;;  %s273_s20 = sand.u32 1, %s450_s6  }
 0x225   : > { %s274_s16 = scalar_lea.sflag [#allocation4], %s273_s20 }
 0x226   : > { %p373_p2 = pnand %p376_p1, %p539_p10 }
 0x228   : > { %p374_p3 = pneg %p373_p2 }
 0x22a   : > { %445 = dma.done.wait (%p374_p3), %s274_s16, 512  }
 0x22b   : > { %447 = vsyncadd (%p374_p3), %s274_s16, 4294966784  ;;  %p14_p4 = scmp.ge.s32.totalorder %s512_s12, 6   ;;  %s634_s6 = smov %s454_s7 }
 0x22c   : > { %s635_s7 = smov %s458_s8  ;;  %s636_s8 = smov %s524_s15 }
 0x22d   : > { %s637_s9 = smov %s512_s12  ;;  %16 = sbr.rel (!%p14_p4) target bundleno = 5 (0x5), region = 79 }
 0x232   :  { %279 = vsyncpa [#allocation3], 1 }
 0x233   :  { %281 = vsyncpa [#allocation3 + $0x1], 1 }
 0x234   :  { %282 = vsyncpa [#allocation4], 1 }
 0x235   :  { %284 = vsyncpa [#allocation4 + $0x1], 1 }

</bundles_post_ra>
